<compile_context>
chip_gen: v7x
topology: tpu7x:2x2x1
jax: 0.10.0
libtpu: 0.0.40
codegen_flags: <defaults>
</compile_context>

<pallas_src>
import math

import jax
import jax.numpy as jnp
from jax.experimental import pallas as pl
from jax.experimental.pallas import tpu as pltpu

LN_EPS = 1e-5


def _downsample_kernel(x_ref, we_ref, wo_ref, b_ref, o_ref):
    # x_ref : (tm, 2, wh, 2C)  row-pair tile, channels-last (lanes = 2C)
    # we_ref: (2C, Cout)       even-image-row weight slab (gamma folded in)
    # wo_ref: (2C, Cout)       odd-image-row weight slab
    # b_ref : (1, Cout) f32    beta @ W
    # o_ref : (tm*wh, Cout)
    er = x_ref[:, 0, :, :].astype(jnp.float32)   # even rows -> channels [x0 | x2]
    od = x_ref[:, 1, :, :].astype(jnp.float32)   # odd rows  -> channels [x1 | x3]

    tm, wh, c2 = er.shape
    inv_n = 1.0 / (2 * c2)                       # 1 / (4C)

    # Joint LayerNorm statistics over the concatenated 4C channels (f32).
    mean = (jnp.sum(er, axis=-1, keepdims=True)
            + jnp.sum(od, axis=-1, keepdims=True)) * inv_n
    er = er - mean
    od = od - mean
    var = (jnp.sum(er * er, axis=-1, keepdims=True)
           + jnp.sum(od * od, axis=-1, keepdims=True)) * inv_n
    inv = jax.lax.rsqrt(var + LN_EPS)

    # Normalize (gamma/beta are folded into the weight slabs / bias); cast to
    # the MXU operand dtype BEFORE the 3D->2D collapse so any relayout copy
    # (when wh % 8 != 0) moves half the bytes in bf16 mode.
    ner = (er * inv).astype(we_ref.dtype).reshape(tm * wh, c2)
    nod = (od * inv).astype(wo_ref.dtype).reshape(tm * wh, c2)

    acc = jnp.dot(ner, we_ref[...], preferred_element_type=jnp.float32)
    acc = acc + jnp.dot(nod, wo_ref[...], preferred_element_type=jnp.float32)
    acc = acc + b_ref[...]
    o_ref[...] = acc.astype(o_ref.dtype)


def _vmem_capacity_bytes():
    """Physical VMEM per TensorCore: 128 MiB on v5e/v6e, 64 MiB on v7x."""
    try:
        info = pltpu.get_tpu_info()
        for attr in ("vmem_capacity_bytes", "vmem_bytes"):
            cap = getattr(info, attr, None)
            if cap:
                return int(cap)
    except Exception:
        pass
    return 64 * 1024 * 1024          # conservative fallback (v7x-sized)


def prepare_swin_downsample_params(gamma, beta, reduction_w, *, mxu_dtype):
    """Fold the LayerNorm affine into the reduction weight and split it into
    even-row / odd-row slabs.  Do this ONCE per parameter set (hoist out of
    the step loop), or jit it together with the caller so XLA hoists it."""
    C4, Cout = reduction_w.shape
    C = C4 // 4
    w = reduction_w.astype(jnp.float32)
    wg = gamma.astype(jnp.float32)[:, None] * w                     # (4C, Cout)
    bias = (beta.astype(jnp.float32) @ w).reshape(1, Cout)          # (1, Cout) f32
    # Merged channel order is [x0, x1, x2, x3]; even image rows carry [x0 | x2],
    # odd image rows carry [x1 | x3].
    w_even = jnp.concatenate([wg[0:C], wg[2 * C:3 * C]], axis=0).astype(mxu_dtype)
    w_odd = jnp.concatenate([wg[C:2 * C], wg[3 * C:4 * C]], axis=0).astype(mxu_dtype)
    return w_even, w_odd, bias


def swin_downsample_prepared(hidden_states, w_even, w_odd, bias, *, H, W,
                             block_rows=4096):
    """hidden_states: (B, H*W, C); returns (B, (H//2)*(W//2), Cout)."""
    B, L, C = hidden_states.shape
    assert L == H * W and H % 2 == 0 and W % 2 == 0
    C2, Cout = w_even.shape
    assert C2 == 2 * C

    wh = W // 2
    row_pairs = B * (H // 2)
    total_rows = row_pairs * wh

    # ---- free view: (B, H*W, C) -> (row_pairs, 2, W/2, 2C)  (metadata only)
    x = hidden_states.reshape(row_pairs, 2, wh, C2)

    act_bytes = jnp.dtype(hidden_states.dtype).itemsize
    w_bytes = jnp.dtype(w_even.dtype).itemsize

    # ---- generation-aware VMEM sizing.
    cap = _vmem_capacity_bytes()
    budget = int(cap * 0.60)          # tile-sizing budget (~77 MiB v6e, ~38 MiB v7x)
    vmem_limit = int(cap * 0.75)      # scoped VMEM limit (96 MiB v6e, 48 MiB v7x)

    def vmem_estimate(t):
        rows = t * wh
        act_in = 2 * (t * 2 * wh * C2) * act_bytes            # double-buffered input
        act_out = 2 * (rows * Cout) * act_bytes               # double-buffered output
        wts = 2 * (2 * (C2 * Cout) * w_bytes + Cout * 4)      # weight slabs + bias
        body_f32 = 5 * (rows * C2) * 4 + (rows * Cout) * 4    # f32 temporaries + acc
        body_mxu = 2 * (rows * C2) * w_bytes                  # reshaped MXU operands
        return act_in + act_out + wts + body_f32 + body_mxu

    # ---- tile size: target ~block_rows output rows per step; keep the output
    # block's sublane dim (tm*wh) a multiple of 8; shrink until it fits VMEM.
    align = 8 // math.gcd(wh, 8)

    def _round_up(a, m):
        return -(-a // m) * m

    tm = _round_up(max(1, block_rows // wh), align)
    tm = min(tm, _round_up(row_pairs, align))
    tm = max(tm, align)
    while tm > align and vmem_estimate(tm) > budget:
        tm -= align

    # ---- guarantee >= 2 grid steps (ideally an even count) so the "parallel"
    # grid axis shards across v7x's two TensorCores; no-op on v5e/v6e.
    max_steps = pl.cdiv(row_pairs, align)
    if max_steps >= 2:
        steps = max(pl.cdiv(row_pairs, tm), 2)
        if steps % 2:
            steps += 1
        steps = min(steps, max_steps)
        tm = min(tm, _round_up(pl.cdiv(row_pairs, steps), align))
    if pl.cdiv(row_pairs, tm) <= 1:
        tm = row_pairs                 # single full block (full-dim blocks are legal)
    grid = pl.cdiv(row_pairs, tm)      # ragged tail block is masked by Pallas

    out_flat = pl.pallas_call(
        _downsample_kernel,
        out_shape=jax.ShapeDtypeStruct((total_rows, Cout), hidden_states.dtype),
        grid_spec=pltpu.PrefetchScalarGridSpec(
            num_scalar_prefetch=0,
            grid=(grid,),
            in_specs=[
                pl.BlockSpec((tm, 2, wh, C2), lambda i: (i, 0, 0, 0)),
                # Constant index maps: Pallas keeps these blocks resident, so
                # they are not re-fetched per step.
                pl.BlockSpec((C2, Cout), lambda i: (0, 0)),
                pl.BlockSpec((C2, Cout), lambda i: (0, 0)),
                pl.BlockSpec((1, Cout), lambda i: (0, 0)),
            ],
            out_specs=pl.BlockSpec((tm * wh, Cout), lambda i: (i, 0)),
        ),
        compiler_params=pltpu.CompilerParams(
            dimension_semantics=("parallel",),      # megacore sharding on v7x
            vmem_limit_bytes=vmem_limit,
        ),
    )(x, w_even, w_odd, bias)

    return out_flat.reshape(B, (H // 2) * (W // 2), Cout)


def swin_downsample(hidden_states, gamma, beta, reduction_w, H, W, *,
                    block_rows=4096, mxu_dtype=None):
    """Convenience wrapper: prepares the folded weight slabs then runs the
    kernel.  For repeated forward calls, call prepare_swin_downsample_params
    once and use swin_downsample_prepared directly."""
    if mxu_dtype is None:
        # bf16 activations -> bf16 MXU operands (halved HBM bytes);
        # f32 activations -> f32 operands (tight parity; HBM-bound so free).
        mxu_dtype = (jnp.bfloat16 if hidden_states.dtype == jnp.bfloat16
                     else jnp.float32)
    w_even, w_odd, bias = prepare_swin_downsample_params(
        gamma, beta, reduction_w, mxu_dtype=mxu_dtype)
    return swin_downsample_prepared(hidden_states, w_even, w_odd, bias,
                                    H=H, W=W, block_rows=block_rows)


def reference(hidden_states, gamma, beta, reduction_w, H, W):
    B, L, C = hidden_states.shape
    x = hidden_states.astype(jnp.float32).reshape(B, H, W, C)
    x0 = x[:, 0::2, 0::2, :]
    x1 = x[:, 1::2, 0::2, :]
    x2 = x[:, 0::2, 1::2, :]
    x3 = x[:, 1::2, 1::2, :]
    m = jnp.concatenate([x0, x1, x2, x3], axis=-1).reshape(B, -1, 4 * C)
    mean = jnp.mean(m, axis=-1, keepdims=True)
    var = jnp.mean((m - mean) ** 2, axis=-1, keepdims=True)
    mn = (m - mean) * jax.lax.rsqrt(var + LN_EPS) * gamma + beta
    return jnp.einsum("blk,kn->bln", mn, reduction_w.astype(jnp.float32),
                      precision=jax.lax.Precision.HIGHEST)


if __name__ == "__main__":
    def make_inputs(key, B, H, W, C):
        k1, k2, k3, k4 = jax.random.split(key, 4)
        hs = jax.random.normal(k1, (B, H * W, C), dtype=jnp.float32)
        gamma = 1.0 + 0.1 * jax.random.normal(k2, (4 * C,), dtype=jnp.float32)
        beta = 0.1 * jax.random.normal(k3, (4 * C,), dtype=jnp.float32)
        w = (jax.random.normal(k4, (4 * C, 2 * C), dtype=jnp.float32)
             * (1.0 / jnp.sqrt(4.0 * C)))
        return hs, gamma, beta, w

    fwd = jax.jit(swin_downsample,
                  static_argnames=("H", "W", "block_rows", "mxu_dtype"))

    # --- case 1: B=2, H=W=16, C=32 (wh=8); f32 activations -> f32 MXU operands.
    B, H, W, C = 2, 16, 16, 32
    hs, gamma, beta, w = make_inputs(jax.random.PRNGKey(0), B, H, W, C)
    ref = reference(hs, gamma, beta, w, H, W)
    out = jax.block_until_ready(fwd(hs, gamma, beta, w, H=H, W=W))
    assert out.shape == (B, (H // 2) * (W // 2), 2 * C)
    assert jnp.allclose(out.astype(jnp.float32), ref, atol=2e-2, rtol=2e-2)

    # --- case 2: odd wh (W/2 = 7), ragged row-pair tail, small tiles.
    B2, H2, W2, C2_ = 3, 10, 14, 32
    hs2, g2, b2, w2 = make_inputs(jax.random.PRNGKey(1), B2, H2, W2, C2_)
    ref2 = reference(hs2, g2, b2, w2, H2, W2)
    out2 = jax.block_until_ready(
        fwd(hs2, g2, b2, w2, H=H2, W=W2, block_rows=40))
    assert out2.shape == (B2, (H2 // 2) * (W2 // 2), 2 * C2_)
    assert jnp.allclose(out2.astype(jnp.float32), ref2, atol=2e-2, rtol=2e-2)

    # --- case 3: bf16 activations end-to-end (half the HBM traffic).
    out3 = jax.block_until_ready(
        fwd(hs.astype(jnp.bfloat16), gamma, beta, w, H=H, W=W))
    assert out3.dtype == jnp.bfloat16
    assert jnp.allclose(out3.astype(jnp.float32), ref, atol=6e-2, rtol=6e-2)

    print("KERNEL_OK")
</pallas_src>

<mosaic_0001>
module attributes {stable_mosaic.version = 11 : i64} {
  func.func @_downsample_kernel(%arg0: i32, %arg1: memref<8x2x8x64xf32, #tpu.memory_space<vmem>>, %arg2: memref<64x64xf32, #tpu.memory_space<vmem>>, %arg3: memref<64x64xf32, #tpu.memory_space<vmem>>, %arg4: memref<1x64xf32, #tpu.memory_space<vmem>>, %arg5: memref<64x64xf32, #tpu.memory_space<vmem>>) attributes {dimension_semantics = [#tpu.dimension_semantics<parallel>], iteration_bounds = array<i64: 2>, scalar_prefetch = 0 : i64, scratch_operands = 0 : i64, tpu.core_type = #tpu.core_type<tc>, window_params = [{transform_indices = @transform_0, window_bounds = array<i64: 8, 2, 8, 64>}, {pipeline_mode = #tpu.pipeline_mode<synchronous>, transform_indices = @transform_1, window_bounds = array<i64: 64, 64>}, {pipeline_mode = #tpu.pipeline_mode<synchronous>, transform_indices = @transform_2, window_bounds = array<i64: 64, 64>}, {pipeline_mode = #tpu.pipeline_mode<synchronous>, transform_indices = @transform_3, window_bounds = array<i64: 1, 64>}, {transform_indices = @transform_4, window_bounds = array<i64: 64, 64>}]} {
    %c0 = arith.constant 0 : index
    %c0_0 = arith.constant 0 : index
    %c0_1 = arith.constant 0 : index
    %c0_2 = arith.constant 0 : index
    %0 = vector.load %arg1[%c0, %c0_0, %c0_1, %c0_2] : memref<8x2x8x64xf32, #tpu.memory_space<vmem>>, vector<8x1x8x64xf32>
    %1 = vector.shape_cast %0 : vector<8x1x8x64xf32> to vector<8x8x64xf32>
    %c0_3 = arith.constant 0 : index
    %c1 = arith.constant 1 : index
    %c0_4 = arith.constant 0 : index
    %c0_5 = arith.constant 0 : index
    %2 = vector.load %arg1[%c0_3, %c1, %c0_4, %c0_5] : memref<8x2x8x64xf32, #tpu.memory_space<vmem>>, vector<8x1x8x64xf32>
    %3 = vector.shape_cast %2 : vector<8x1x8x64xf32> to vector<8x8x64xf32>
    %cst = arith.constant dense<0.000000e+00> : vector<8x8xf32>
    %4 = vector.multi_reduction <add>, %1, %cst [2] : vector<8x8x64xf32> to vector<8x8xf32>
    %5 = vector.shape_cast %4 : vector<8x8xf32> to vector<8x8x1xf32>
    %cst_6 = arith.constant dense<0.000000e+00> : vector<8x8xf32>
    %6 = vector.multi_reduction <add>, %3, %cst_6 [2] : vector<8x8x64xf32> to vector<8x8xf32>
    %7 = vector.shape_cast %6 : vector<8x8xf32> to vector<8x8x1xf32>
    %8 = arith.addf %5, %7 : vector<8x8x1xf32>
    %cst_7 = arith.constant 7.812500e-03 : f32
    %9 = vector.broadcast %cst_7 : f32 to vector<8x8x1xf32>
    %10 = arith.mulf %8, %9 : vector<8x8x1xf32>
    %11 = vector.broadcast %10 : vector<8x8x1xf32> to vector<8x8x64xf32>
    %12 = arith.subf %1, %11 : vector<8x8x64xf32>
    %13 = vector.broadcast %10 : vector<8x8x1xf32> to vector<8x8x64xf32>
    %14 = arith.subf %3, %13 : vector<8x8x64xf32>
    %15 = arith.mulf %12, %12 : vector<8x8x64xf32>
    %cst_8 = arith.constant dense<0.000000e+00> : vector<8x8xf32>
    %16 = vector.multi_reduction <add>, %15, %cst_8 [2] : vector<8x8x64xf32> to vector<8x8xf32>
    %17 = vector.shape_cast %16 : vector<8x8xf32> to vector<8x8x1xf32>
    %18 = arith.mulf %14, %14 : vector<8x8x64xf32>
    %cst_9 = arith.constant dense<0.000000e+00> : vector<8x8xf32>
    %19 = vector.multi_reduction <add>, %18, %cst_9 [2] : vector<8x8x64xf32> to vector<8x8xf32>
    %20 = vector.shape_cast %19 : vector<8x8xf32> to vector<8x8x1xf32>
    %21 = arith.addf %17, %20 : vector<8x8x1xf32>
    %cst_10 = arith.constant 7.812500e-03 : f32
    %22 = vector.broadcast %cst_10 : f32 to vector<8x8x1xf32>
    %23 = arith.mulf %21, %22 : vector<8x8x1xf32>
    %cst_11 = arith.constant 9.99999974E-6 : f32
    %24 = vector.broadcast %cst_11 : f32 to vector<8x8x1xf32>
    %25 = arith.addf %23, %24 : vector<8x8x1xf32>
    %26 = math.rsqrt %25 : vector<8x8x1xf32>
    %27 = vector.broadcast %26 : vector<8x8x1xf32> to vector<8x8x64xf32>
    %28 = arith.mulf %12, %27 : vector<8x8x64xf32>
    %29 = vector.shape_cast %28 : vector<8x8x64xf32> to vector<64x64xf32>
    %30 = vector.broadcast %26 : vector<8x8x1xf32> to vector<8x8x64xf32>
    %31 = arith.mulf %14, %30 : vector<8x8x64xf32>
    %32 = vector.shape_cast %31 : vector<8x8x64xf32> to vector<64x64xf32>
    %c0_12 = arith.constant 0 : index
    %c0_13 = arith.constant 0 : index
    %33 = vector.load %arg2[%c0_12, %c0_13] : memref<64x64xf32, #tpu.memory_space<vmem>>, vector<64x64xf32>
    %cst_14 = arith.constant dense<0.000000e+00> : vector<64x64xf32>
    %34 = tpu.matmul %29, %33, %cst_14 {dimension_numbers = #tpu.dot_dimension_numbers<[1], [0], [0], [1], [0, 0, 1, 1], [], []>} : vector<64x64xf32>, vector<64x64xf32>, vector<64x64xf32> -> vector<64x64xf32>
    %c0_15 = arith.constant 0 : index
    %c0_16 = arith.constant 0 : index
    %35 = vector.load %arg3[%c0_15, %c0_16] : memref<64x64xf32, #tpu.memory_space<vmem>>, vector<64x64xf32>
    %cst_17 = arith.constant dense<0.000000e+00> : vector<64x64xf32>
    %36 = tpu.matmul %32, %35, %cst_17 {dimension_numbers = #tpu.dot_dimension_numbers<[1], [0], [0], [1], [0, 0, 1, 1], [], []>} : vector<64x64xf32>, vector<64x64xf32>, vector<64x64xf32> -> vector<64x64xf32>
    %37 = arith.addf %34, %36 : vector<64x64xf32>
    %c0_18 = arith.constant 0 : index
    %c0_19 = arith.constant 0 : index
    %38 = vector.load %arg4[%c0_18, %c0_19] : memref<1x64xf32, #tpu.memory_space<vmem>>, vector<1x64xf32>
    %39 = vector.broadcast %38 : vector<1x64xf32> to vector<64x64xf32>
    %40 = arith.addf %37, %39 : vector<64x64xf32>
    %c0_20 = arith.constant 0 : index
    %c0_21 = arith.constant 0 : index
    %41 = vector.load %arg5[%c0_20, %c0_21] : memref<64x64xf32, #tpu.memory_space<vmem>>, vector<64x64xf32>
    tpu.vector_store %arg5[%c0_20, %c0_21], %40 {strides = array<i32>} : memref<64x64xf32, #tpu.memory_space<vmem>>, vector<64x64xf32>,
    return
  }
  func.func @transform_0(%arg0: i32) -> (i32, i32, i32, i32) {
    %c0_i32 = arith.constant 0 : i32
    %c0_i32_0 = arith.constant 0 : i32
    %c0_i32_1 = arith.constant 0 : i32
    %c0_i32_2 = arith.constant 0 : i32
    return %arg0, %c0_i32, %c0_i32_0, %c0_i32_1 : i32, i32, i32, i32
  }
  func.func @transform_1(%arg0: i32) -> (i32, i32) {
    %c0_i32 = arith.constant 0 : i32
    %c0_i32_0 = arith.constant 0 : i32
    %c0_i32_1 = arith.constant 0 : i32
    return %c0_i32, %c0_i32_0 : i32, i32
  }
  func.func @transform_2(%arg0: i32) -> (i32, i32) {
    %c0_i32 = arith.constant 0 : i32
    %c0_i32_0 = arith.constant 0 : i32
    %c0_i32_1 = arith.constant 0 : i32
    return %c0_i32, %c0_i32_0 : i32, i32
  }
  func.func @transform_3(%arg0: i32) -> (i32, i32) {
    %c0_i32 = arith.constant 0 : i32
    %c0_i32_0 = arith.constant 0 : i32
    %c0_i32_1 = arith.constant 0 : i32
    return %c0_i32, %c0_i32_0 : i32, i32
  }
  func.func @transform_4(%arg0: i32) -> (i32, i32) {
    %c0_i32 = arith.constant 0 : i32
    %c0_i32_0 = arith.constant 0 : i32
    return %arg0, %c0_i32 : i32, i32
  }
}

</mosaic_0001>

<bundles_post_ra>
// kernel: swin_downsample.1
= control target key start
LH: loop header
LB: loop body
LE: loop exit
PB: predicated region body
PF: predicated region fallthrough
CT: control target
= control target key end

     0   :  { %9 = vsyncpa [#allocation3], 0  ;;  %s1468_s0 = inlined_call_operand.vmem [shape: f32[16,2,8,64], index: 0, kind: input, shape index: {}]   ;;  %s1469_s1 = inlined_call_operand.vmem [shape: f32[64,64], index: 1, kind: input, shape index: {}]   ;;  %s1470_s2 = inlined_call_operand.vmem [shape: f32[64,64], index: 2, kind: input, shape index: {}]   ;;  %s1471_s3 = inlined_call_operand.vmem [shape: f32[1,64], index: 3, kind: input, shape index: {}]   ;;  %s1472_s4 = inlined_call_operand.hbm [shape: f32[128,64], index: 4, kind: output, shape index: {}]  }
   0x1   :  { %11 = vsyncpa [#allocation3 + $0x1], 0  ;;  %s1102_s15 = smov 0   ;;  %s1104_s16 = smov 0  }
   0x2   :  { %s1106_s17 = smov 0   ;;  %s1108_s18 = smov 0  }
   0x3 LB: > { %s1123_s19 = sadd.s32 4294967295, %s1072_s18   ;;  %s785_s20 = sadd.s32 4294967294, %s1072_s18   ;;  %s1072_s18 = sphi %s1108_s18, %s1478_s18   ;;  %s1068_s17 = sphi %s1106_s17, %s1477_s17   ;;  %s1064_s16 = sphi %s1104_s16, %s1476_s16   ;;  %s1060_s15 = sphi %s1102_s15, %s1475_s15  }
   0x4   : > { %s1127_s21 = sadd.s32 1, %s1072_s18   ;;  %s113_s22 = sadd.s32 1, %s1068_s17 }
   0x5   : > { %s110_s23 = ssub.s32 %s1072_s18, %s1127_s21  ;;  %p123_p0 = scmp.ne.s32.totalorder %s1068_s17, %s1064_s16 }
   0x6   : > { %p111_p1 = scmp.eq.s32.totalorder %s110_s23, 0  ;;  %p124_p2 = scmp.eq.s32.totalorder %s1123_s19, 1 }
   0x7   : > { %p129_p3 = scmp.ne.s32.totalorder %s1064_s16, %s1060_s15  ;;  %p130_p4 = scmp.eq.s32.totalorder %s785_s20, 1 }
   0x8   : > { %s1138_s24 = scalar_select %p111_p1, %s1068_s17, %s113_s22  }
   0x9   : > { %p1140_p5 = por %p124_p2, %p123_p0  ;;  %p1144_p6 = por %p130_p4, %p129_p3 }
   0xa   : > { %p788_p7 = scmp.ge.s32.totalorder %s1072_s18, 1  ;;  %p167_p8 = scmp.lt.s32.totalorder %s1072_s18, 3 }
   0xc   : > { %p168_p9 = pnand %p788_p7, %p167_p8 }
   0xd   : > { %s790_s27 = sshll.u32 (!%p168_p9), %s1123_s19, 3  ;;  %vm219_vm0 = vcmask (!%p168_p9), 523264   ;;  %s191_s30 = sand.u32 (!%p168_p9), 1, %s1064_s16  }
   0xe   : > { %171 = sbr.rel (%p168_p9) target bundleno = 602 (0x25a), region = 36  ;;  %p195_p10 = scmp.lt.s32.totalorder (!%p168_p9), %s790_s27, 15 }
   0xf   : > { %s824_s9 = sshll.u32 (!%p168_p9), %s1123_s19, 10  ;;  %s1427_s19 = scalar_lea.sflag (!%p168_p9), [#allocation3], %s191_s30 }
  0x10   : > { %s1417_s13 = scalar_lea.hbm (!%p168_p9), %s1472_s4, %s824_s9  ;;  %s1074_s20 = smov (!%p168_p9), [#allocation2]  }
  0x11   : > { %s1014_s22 = sshll.u32 (!%p168_p9), %s1074_s20, 4  ;;  %s1015_s22 = int_to_ptr.vmem [resolvable:$false] %s1014_s22 }
  0x12   : > { %s1016_s23 = scalar_lea.vmem (!%p168_p9), %s1015_s22, 2048 }
  0x15   : > { %s1480_s27 = smov (!%p195_p10, %s790_s27), 15 }
  0x16   : > { %s823_s28 = sshll.u32 %s1480_s27, 4 }
  0x17   : > { %s1154_s5 = scalar_lea.vmem %s1468_s0, %s823_s28 }
  0x18   : > { %v203_v0 = vld [vmem:[%s1154_s5 + $0x10] sm:$0xff]  ;;  %v202_v1 = vld [vmem:[%s1154_s5] sm:$0xff]  ;;  %v794_v2 = vld [vmem:[%s1154_s5 + $0x18] sm:$0xff] }
  0x19   : > { %v223_v3 = vsel %vm219_vm0, %v203_v0, 0.0  ;;  %v220_v4 = vsel %vm219_vm0, %v202_v1, 0.0  ;;  %v793_v5 = vld [vmem:[%s1154_s5 + $0x8] sm:$0xff]  ;;  %v247_v6 = vsel %vm219_vm0, %v794_v2, 0.0  ;;  %v204_v9 = vld [vmem:[%s1154_s5 + $0x20] sm:$0xff]  ;;  %v1172_v12 = vld [vmem:[%s1154_s5 + $0x38] sm:$0xff] }
  0x1a   : > { %224 = vadd.xlane.f32.xlu1 %v223_v3  ;;  %221 = vadd.xlane.f32.xlu0 %v220_v4  ;;  %v244_v7 = vsel %vm219_vm0, %v793_v5, 0.0  ;;  %v1165_v8 = vld [vmem:[%s1154_s5 + $0x28] sm:$0xff]  ;;  %v226_v11 = vsel %vm219_vm0, %v204_v9, 0.0  ;;  %v1175_v13 = vld [vmem:[%s1154_s5 + $0x30] sm:$0xff]  ;;  %v253_v14 = vsel %vm219_vm0, %v1172_v12, 0.0  ;;  %v1185_v17 = vld [vmem:[%s1154_s5 + $0x40] sm:$0xff] }
  0x1b   : > { %v250_v10 = vsel %vm219_vm0, %v1165_v8, 0.0  ;;  %v229_v15 = vsel %vm219_vm0, %v1175_v13, 0.0  ;;  %v1182_v16 = vld [vmem:[%s1154_s5 + $0x48] sm:$0xff]  ;;  %v232_v19 = vsel %vm219_vm0, %v1185_v17, 0.0  ;;  %v1192_v20 = vld [vmem:[%s1154_s5 + $0x58] sm:$0xff]  ;;  %v1195_v21 = vld [vmem:[%s1154_s5 + $0x50] sm:$0xff] }
  0x1c   : > { %v256_v18 = vsel %vm219_vm0, %v1182_v16, 0.0  ;;  %v259_v22 = vsel %vm219_vm0, %v1192_v20, 0.0  ;;  %v235_v23 = vsel %vm219_vm0, %v1195_v21, 0.0  ;;  %v1202_v24 = vld [vmem:[%s1154_s5 + $0x68] sm:$0xff]  ;;  %v1205_v25 = vld [vmem:[%s1154_s5 + $0x60] sm:$0xff]  ;;  %v1212_v28 = vld [vmem:[%s1154_s5 + $0x78] sm:$0xff] }
  0x1d   : > { %v262_v26 = vsel %vm219_vm0, %v1202_v24, 0.0  ;;  %v238_v27 = vsel %vm219_vm0, %v1205_v25, 0.0  ;;  %v1215_v29 = vld [vmem:[%s1154_s5 + $0x70] sm:$0xff]  ;;  %v265_v30 = vsel %vm219_vm0, %v1212_v28, 0.0  ;;  %s789_s5 = sshll.u32 %s191_s30, 6 }
  0x1e   : > { %248 = vadd.xlane.f32.xlu1 %v247_v6  ;;  %245 = vadd.xlane.f32.xlu0 %v244_v7  ;;  %v241_v31 = vsel %vm219_vm0, %v1215_v29, 0.0  ;;  %s1398_s8 = scalar_lea.vmem [#allocation2], %s789_s5 }
  0x1f   : > { %s723_s10 = sshll.u32 %s1398_s8, 4  ;;  %s1419_s10 = int_to_ptr.vmem [resolvable:$true] %s723_s10 }
  0x20   : > { %s1010_s14 = scalar_lea.vmem %s1419_s10, 1024  ;;  %p1017_p0 = scmp.lt.s32.totalorder %s1419_s10, %s1015_s22 }
  0x21   : > { %p1011_p11 = scmp.ne.s32.totalorder %s1419_s10, %s1010_s14  ;;  %p1018_p1 = scmp.lt.s32.totalorder %s1016_s23, %s1010_s14 }
  0x22   : > { %251 = vadd.xlane.f32.xlu1 %v250_v10  ;;  %227 = vadd.xlane.f32.xlu0 %v226_v11 }
  0x23   : > { %p1012_p12 = pnand %p1011_p11, %p1140_p5  ;;  %p1019_p2 = por %p1018_p1, %p1017_p0 }
  0x25   : > { %p1013_p13 = pneg %p1012_p12 }
  0x26   : > { %254 = vadd.xlane.f32.xlu1 %v253_v14  ;;  %230 = vadd.xlane.f32.xlu0 %v229_v15 }
  0x27   : > { %p1020_p3 = pnand %p1019_p2, %p1013_p13 }
  0x2a   : > { %257 = vadd.xlane.f32.xlu1 %v256_v18  ;;  %233 = vadd.xlane.f32.xlu0 %v232_v19 }
  0x2e   : > { %260 = vadd.xlane.f32.xlu1 %v259_v22  ;;  %236 = vadd.xlane.f32.xlu0 %v235_v23 }
  0x32   : > { %263 = vadd.xlane.f32.xlu1 %v262_v26  ;;  %239 = vadd.xlane.f32.xlu0 %v238_v27 }
  0x36   : > { %266 = vadd.xlane.f32.xlu1 %v265_v30  ;;  %242 = vadd.xlane.f32.xlu0 %v241_v31 }
  0xa7   : > { %v225_v32 = vpop.xlane.xlu1 %224  ;;  %v222_v33 = vpop.xlane.xlu0 %221 }
  0xab   : > { %v249_v34 = vpop.xlane.xlu1 %248  ;;  %v246_v35 = vpop.xlane.xlu0 %245 }
  0xac   : > { %v269_v36 = vadd.f32 %v249_v34, %v225_v32  ;;  %v268_v37 = vadd.f32 %v246_v35, %v222_v33 }
  0xae   : > { %v277_v38 = vmul.f32 0.0078125, %v269_v36  ;;  %v276_v39 = vmul.f32 0.0078125, %v268_v37 }
  0xaf   : > { %v252_v40 = vpop.xlane.xlu1 %251  ;;  %v228_v41 = vpop.xlane.xlu0 %227 }
  0xb0   : > { %v1221_v42 = vsub.f32 %v203_v0, %v277_v38  ;;  %v1223_v43 = vsub.f32 %v794_v2, %v277_v38  ;;  %v1225_v44 = vsub.f32 %v202_v1, %v276_v39  ;;  %v1227_v45 = vsub.f32 %v793_v5, %v276_v39 }
  0xb1   : > { %v270_v46 = vadd.f32 %v252_v40, %v228_v41 }
  0xb2   : > { %v332_v47 = vmul.f32 %v1227_v45, %v1227_v45  ;;  %v300_v48 = vmul.f32 %v1225_v44, %v1225_v44  ;;  %v333_v52 = vmul.f32 %v1223_v43, %v1223_v43  ;;  %v301_v56 = vmul.f32 %v1221_v42, %v1221_v42 }
  0xb3   : > { %v278_v49 = vmul.f32 0.0078125, %v270_v46  ;;  %v255_v50 = vpop.xlane.xlu1 %254  ;;  %v231_v51 = vpop.xlane.xlu0 %230 }
  0xb4   : > { %v340_v53 = vsel %vm219_vm0, %v332_v47, 0.0  ;;  %v308_v54 = vsel %vm219_vm0, %v300_v48, 0.0  ;;  %v271_v55 = vadd.f32 %v255_v50, %v231_v51  ;;  %v343_v60 = vsel %vm219_vm0, %v333_v52, 0.0  ;;  %v420_v48 = vld [vmem:[%s1470_s2] sm:$0xff] }
  0xb5   : > { %v1239_v57 = vsub.f32 %v204_v9, %v278_v49  ;;  %v1242_v58 = vsub.f32 %v1165_v8, %v278_v49  ;;  %341 = vadd.xlane.f32.xlu1 %v340_v53  ;;  %309 = vadd.xlane.f32.xlu0 %v308_v54  ;;  %v311_v3 = vsel %vm219_vm0, %v301_v56, 0.0  ;;  %v421_v49 = vld [vmem:[%s1470_s2 + $0x8] sm:$0xff]  ;;  %v412_v50 = vld [vmem:[%s1469_s1] sm:$0xff]  ;;  %v422_v56 = vld [vmem:[%s1470_s2 + $0x10] sm:$0xff] }
  0xb6   : > { %v279_v59 = vmul.f32 0.0078125, %v271_v55  ;;  %v913_v51 = vpack.c.bf16 %v421_v49, %v420_v48 }
  0xb7   : > { %v258_v61 = vpop.xlane.xlu1 %257  ;;  %v234_v62 = vpop.xlane.xlu0 %233  ;;  %v334_v63 = vmul.f32 %v1242_v58, %v1242_v58  ;;  %v302_v0 = vmul.f32 %v1239_v57, %v1239_v57 }
  0xb8   : > { %v1250_v1 = vsub.f32 %v1175_v13, %v279_v59  ;;  %v1253_v2 = vsub.f32 %v1172_v12, %v279_v59  ;;  %v272_v4 = vadd.f32 %v258_v61, %v234_v62  ;;  %914 = vmatprep.subr.bf16.mxu1 %v913_v51  ;;  %v423_v59 = vld [vmem:[%s1470_s2 + $0x18] sm:$0xff] }
  0xb9   : > { %344 = vadd.xlane.f32.xlu1 %v343_v60  ;;  %312 = vadd.xlane.f32.xlu0 %v311_v3  ;;  %v346_v5 = vsel %vm219_vm0, %v334_v63, 0.0  ;;  %v314_v7 = vsel %vm219_vm0, %v302_v0, 0.0  ;;  %v414_v60 = vld [vmem:[%s1469_s1 + $0x10] sm:$0xff]  ;;  %v917_v61 = vpack.c.bf16 %v423_v59, %v422_v56  ;;  %v415_v62 = vld [vmem:[%s1469_s1 + $0x18] sm:$0xff] }
  0xba   : > { %v280_v6 = vmul.f32 0.0078125, %v272_v4  ;;  %v335_v8 = vmul.f32 %v1253_v2, %v1253_v2  ;;  %v303_v9 = vmul.f32 %v1250_v1, %v1250_v1  ;;  %916 = vmatpush3.bf16.msra.mxu1 %v913_v51  ;;  %v933_v3 = vpack.c.bf16 %v415_v62, %v414_v60  ;;  %v424_v4 = vld [vmem:[%s1470_s2 + $0x20] sm:$0xff] }
  0xbb   : > { %v261_v10 = vpop.xlane.xlu1 %260  ;;  %v237_v11 = vpop.xlane.xlu0 %236  ;;  %918 = vmatprep.subr.bf16.mxu1 %v917_v61 }
  0xbc   : > { %v1263_v12 = vsub.f32 %v1185_v17, %v280_v6  ;;  %v1266_v13 = vsub.f32 %v1182_v16, %v280_v6  ;;  %v273_v14 = vadd.f32 %v261_v10, %v237_v11  ;;  %v349_v15 = vsel %vm219_vm0, %v335_v8, 0.0  ;;  %v416_v6 = vld [vmem:[%s1469_s1 + $0x20] sm:$0xff]  ;;  %v417_v8 = vld [vmem:[%s1469_s1 + $0x28] sm:$0xff]  ;;  %v426_v10 = vld [vmem:[%s1470_s2 + $0x30] sm:$0xff] }
  0xbd   : > { %347 = vadd.xlane.f32.xlu1 %v346_v5  ;;  %315 = vadd.xlane.f32.xlu0 %v314_v7  ;;  %v317_v19 = vsel %vm219_vm0, %v303_v9, 0.0  ;;  %v425_v5 = vld [vmem:[%s1470_s2 + $0x28] sm:$0xff]  ;;  %v937_v9 = vpack.c.bf16 %v417_v8, %v416_v6  ;;  %v427_v11 = vld [vmem:[%s1470_s2 + $0x38] sm:$0xff] }
  0xbe   : > { %v281_v18 = vmul.f32 0.0078125, %v273_v14  ;;  %v336_v22 = vmul.f32 %v1266_v13, %v1266_v13  ;;  %v304_v23 = vmul.f32 %v1263_v12, %v1263_v12  ;;  %920 = vmatpush3.bf16.msra.mxu1 %v917_v61  ;;  %v921_v7 = vpack.c.bf16 %v425_v5, %v424_v4  ;;  %v418_v14 = vld [vmem:[%s1469_s1 + $0x30] sm:$0xff] }
  0xbf   : > { %v264_v26 = vpop.xlane.xlu1 %263  ;;  %v240_v17 = vpop.xlane.xlu0 %239 }
  0xc0   : > { %v1275_v27 = vsub.f32 %v1195_v21, %v281_v18  ;;  %v1278_v16 = vsub.f32 %v1192_v20, %v281_v18  ;;  %v274_v30 = vadd.f32 %v264_v26, %v240_v17  ;;  %v352_v31 = vsel %vm219_vm0, %v336_v22, 0.0  ;;  %922 = vmatprep.subr.bf16.mxu1 %v921_v7  ;;  %v419_v18 = vld [vmem:[%s1469_s1 + $0x38] sm:$0xff] }
  0xc1   : > { %350 = vadd.xlane.f32.xlu1 %v349_v15  ;;  %318 = vadd.xlane.f32.xlu0 %v317_v19  ;;  %v320_v33 = vsel %vm219_vm0, %v304_v23, 0.0  ;;  %v925_v15 = vpack.c.bf16 %v427_v11, %v426_v10  ;;  %v941_v19 = vpack.c.bf16 %v419_v18, %v418_v14 }
  0xc2   : > { %v282_v32 = vmul.f32 0.0078125, %v274_v30  ;;  %v337_v34 = vmul.f32 %v1278_v16, %v1278_v16  ;;  %v305_v35 = vmul.f32 %v1275_v27, %v1275_v27  ;;  %924 = vmatpush3.bf16.msra.mxu1 %v921_v7 }
  0xc3   : > { %v267_v36 = vpop.xlane.xlu1 %266  ;;  %v243_v21 = vpop.xlane.xlu0 %242  ;;  %926 = vmatprep.subr.bf16.mxu1 %v925_v15 }
  0xc4   : > { %v1287_v37 = vsub.f32 %v1205_v25, %v282_v32  ;;  %v1290_v20 = vsub.f32 %v1202_v24, %v282_v32  ;;  %v275_v38 = vadd.f32 %v267_v36, %v243_v21  ;;  %v355_v39 = vsel %vm219_vm0, %v337_v34, 0.0 }
  0xc5   : > { %353 = vadd.xlane.f32.xlu1 %v352_v31  ;;  %321 = vadd.xlane.f32.xlu0 %v320_v33  ;;  %v323_v41 = vsel %vm219_vm0, %v305_v35, 0.0 }
  0xc6   : > { %v283_v40 = vmul.f32 0.0078125, %v275_v38  ;;  %v338_v46 = vmul.f32 %v1290_v20, %v1290_v20  ;;  %v306_v47 = vmul.f32 %v1287_v37, %v1287_v37  ;;  %928 = vmatpush3.bf16.msra.mxu1 %v925_v15 }
  0xc8   : > { %v1299_v25 = vsub.f32 %v1215_v29, %v283_v40  ;;  %v1302_v24 = vsub.f32 %v1212_v28, %v283_v40  ;;  %v358_v29 = vsel %vm219_vm0, %v338_v46, 0.0  ;;  %v413_v28 = vld [vmem:[%s1469_s1 + $0x8] sm:$0xff]  ;;  %v326_v52 = vsel %vm219_vm0, %v306_v47, 0.0 }
  0xc9   : > { %356 = vadd.xlane.f32.xlu1 %v355_v39  ;;  %324 = vadd.xlane.f32.xlu0 %v323_v41  ;;  %v929_v55 = vpack.c.bf16 %v413_v28, %v412_v50 }
  0xca   : > { %v339_v53 = vmul.f32 %v1302_v24, %v1302_v24  ;;  %v307_v54 = vmul.f32 %v1299_v25, %v1299_v25 }
  0xcb   : > { %930 = vmatprep.subr.bf16.mxu0 %v929_v55 }
  0xcc   : > { %v361_v63 = vsel %vm219_vm0, %v339_v53, 0.0  ;;  %v329_v0 = vsel %vm219_vm0, %v307_v54, 0.0  ;;  %932 = vmatpush3.bf16.msra.mxu0 %v929_v55 }
  0xcd   : > { %359 = vadd.xlane.f32.xlu1 %v358_v29  ;;  %327 = vadd.xlane.f32.xlu0 %v326_v52 }
  0xce   : > { %934 = vmatprep.subr.bf16.mxu0 %v933_v3 }
  0xd0   : > { %936 = vmatpush3.bf16.msra.mxu0 %v933_v3 }
  0xd1   : > { %362 = vadd.xlane.f32.xlu1 %v361_v63  ;;  %330 = vadd.xlane.f32.xlu0 %v329_v0 }
  0xd2   : > { %938 = vmatprep.subr.bf16.mxu0 %v937_v9 }
  0xd4   : > { %940 = vmatpush3.bf16.msra.mxu0 %v937_v9 }
  0xd5   : > { %942 = vmatprep.subr.bf16.mxu0 %v941_v19 }
  0xd8   : > { %944 = vmatpush3.bf16.msra.mxu0 %v941_v19 }
 0x142   : > { %v342_v22 = vpop.xlane.xlu1 %341  ;;  %v310_v23 = vpop.xlane.xlu0 %309 }
 0x143   : > { %v364_v26 = vadd.f32 %v342_v22, %v310_v23 }
 0x145   : > { %v372_v17 = vmul.f32 0.0078125, %v364_v26 }
 0x146   : > { %v345_v30 = vpop.xlane.xlu1 %344  ;;  %v313_v31 = vpop.xlane.xlu0 %312 }
 0x147   : > { %v380_v32 = vadd.f32 1e-05, %v372_v17  ;;  %v365_v33 = vadd.f32 %v345_v30, %v313_v31 }
 0x149   : > { %994 = vrsqrt.f32 %v380_v32  ;;  %v373_v34 = vmul.f32 0.0078125, %v365_v33 }
 0x14a   : > { %v348_v35 = vpop.xlane.xlu1 %347  ;;  %v316_v36 = vpop.xlane.xlu0 %315 }
 0x14b   : > { %v381_v21 = vadd.f32 1e-05, %v373_v34  ;;  %v366_v38 = vadd.f32 %v348_v35, %v316_v36 }
 0x14d   : > { %996 = vrsqrt.f32 %v381_v21  ;;  %v374_v39 = vmul.f32 0.0078125, %v366_v38 }
 0x14e   : > { %v351_v40 = vpop.xlane.xlu1 %350  ;;  %v319_v41 = vpop.xlane.xlu0 %318 }
 0x14f   : > { %v382_v46 = vadd.f32 1e-05, %v374_v39  ;;  %v367_v47 = vadd.f32 %v351_v40, %v319_v41 }
 0x151   : > { %998 = vrsqrt.f32 %v382_v46  ;;  %v375_v48 = vmul.f32 0.0078125, %v367_v47 }
 0x152   : > { %v354_v49 = vpop.xlane.xlu1 %353  ;;  %v322_v50 = vpop.xlane.xlu0 %321 }
 0x153   : > { %v995_v29 = vpop.eup %994  ;;  %v383_v51 = vadd.f32 1e-05, %v375_v48  ;;  %v368_v28 = vadd.f32 %v354_v49, %v322_v50 }
 0x154   : > { %v404_v52 = vmul.f32 %v995_v29, %v1227_v45  ;;  %v396_v53 = vmul.f32 %v995_v29, %v1225_v44 }
 0x155   : > { %1000 = vrsqrt.f32 %v383_v51  ;;  %v376_v54 = vmul.f32 0.0078125, %v368_v28 }
 0x156   : > { %v357_v55 = vpop.xlane.xlu1 %356  ;;  %873 = vmatprep.mubr.msk.f32.mxu1 %vm219_vm0, %v404_v52  ;;  %901 = vmatprep.mubr.msk.f32.mxu0 %vm219_vm0, %v396_v53  ;;  %v325_v56 = vpop.xlane.xlu0 %324 }
 0x157   : > { %v997_v59 = vpop.eup %996  ;;  %v384_v60 = vadd.f32 1e-05, %v376_v54  ;;  %v369_v61 = vadd.f32 %v357_v55, %v325_v56 }
 0x158   : > { %v405_v62 = vmul.f32 %v997_v59, %v1223_v43  ;;  %v397_v63 = vmul.f32 %v997_v59, %v1221_v42 }
 0x159   : > { %1002 = vrsqrt.f32 %v384_v60  ;;  %v377_v0 = vmul.f32 0.0078125, %v369_v61 }
 0x15a   : > { %v360_v45 = vpop.xlane.xlu1 %359  ;;  %874 = vmatmul.mubr.msk.f32.vlgmr.msra.gmra.mrb[0].mxu1 %vm219_vm0, %v405_v62  ;;  %902 = vmatmul.mubr.msk.f32.vlgmr.msra.gmra.mrb[0].mxu0 %vm219_vm0, %v397_v63  ;;  %v328_v44 = vpop.xlane.xlu0 %327 }
 0x15b   : > { %v999_v3 = vpop.eup %998  ;;  %v385_v4 = vadd.f32 1e-05, %v377_v0  ;;  %v370_v5 = vadd.f32 %v360_v45, %v328_v44 }
 0x15c   : > { %v406_v6 = vmul.f32 %v999_v3, %v1242_v58  ;;  %v398_v7 = vmul.f32 %v999_v3, %v1239_v57 }
 0x15d   : > { %1004 = vrsqrt.f32 %v385_v4  ;;  %v378_v8 = vmul.f32 0.0078125, %v370_v5 }
 0x15e   : > { %v363_v43 = vpop.xlane.xlu1 %362  ;;  %876 = vmatprep.mubr.msk.f32.mxu1 %vm219_vm0, %v406_v6  ;;  %904 = vmatprep.mubr.msk.f32.mxu0 %vm219_vm0, %v398_v7  ;;  %v331_v42 = vpop.xlane.xlu0 %330 }
 0x15f   : > { %v1001_v9 = vpop.eup %1000  ;;  %v386_v10 = vadd.f32 1e-05, %v378_v8  ;;  %v371_v11 = vadd.f32 %v363_v43, %v331_v42 }
 0x160   : > { %v407_v14 = vmul.f32 %v1001_v9, %v1253_v2  ;;  %v399_v15 = vmul.f32 %v1001_v9, %v1250_v1 }
 0x161   : > { %1006 = vrsqrt.f32 %v386_v10  ;;  %v379_v18 = vmul.f32 0.0078125, %v371_v11 }
 0x162   : > { %877 = vmatmul.mubr.msk.f32.gmra.mrb[2].mxu1 %vm219_vm0, %v407_v14  ;;  %905 = vmatmul.mubr.msk.f32.gmra.mrb[2].mxu0 %vm219_vm0, %v399_v15 }
 0x163   : > { %v1003_v57 = vpop.eup %1002  ;;  %v387_v58 = vadd.f32 1e-05, %v379_v18 }
 0x164   : > { %v408_v19 = vmul.f32 %v1003_v57, %v1266_v13  ;;  %v400_v22 = vmul.f32 %v1003_v57, %v1263_v12 }
 0x165   : > { %1008 = vrsqrt.f32 %v387_v58 }
 0x166   : > { %879 = vmatprep.mubr.msk.f32.mxu1 %vm219_vm0, %v408_v19  ;;  %907 = vmatprep.mubr.msk.f32.mxu0 %vm219_vm0, %v400_v22 }
 0x167   : > { %v1005_v2 = vpop.eup %1004 }
 0x168   : > { %v409_v1 = vmul.f32 %v1005_v2, %v1278_v16  ;;  %v401_v23 = vmul.f32 %v1005_v2, %v1275_v27 }
 0x16a   : > { %880 = vmatmul.mubr.msk.f32.gmra.mrb[4].mxu1 %vm219_vm0, %v409_v1  ;;  %908 = vmatmul.mubr.msk.f32.gmra.mrb[4].mxu0 %vm219_vm0, %v401_v23 }
 0x16b   : > { %v1007_v26 = vpop.eup %1006 }
 0x16c   : > { %v410_v13 = vmul.f32 %v1007_v26, %v1290_v20  ;;  %v402_v12 = vmul.f32 %v1007_v26, %v1287_v37  ;;  %v817_v37 = vld [vmem:[%s1471_s3] ss:$0 sm:$0xff] }
 0x16e   : > { %882 = vmatprep.mubr.msk.f32.mxu1 %vm219_vm0, %v410_v13  ;;  %910 = vmatprep.mubr.msk.f32.mxu0 %vm219_vm0, %v402_v12 }
 0x16f   : > { %v1009_v17 = vpop.eup %1008 }
 0x170   : > { %v411_v30 = vmul.f32 %v1009_v17, %v1302_v24  ;;  %v403_v16 = vmul.f32 %v1009_v17, %v1299_v25 }
 0x172   : > { %883 = vmatmul.mubr.msk.f32.gmra.mrb[6].mxu1 %vm219_vm0, %v411_v30  ;;  %911 = vmatmul.mubr.msk.f32.gmra.mrb[6].mxu0 %vm219_vm0, %v403_v16 }
 0x22d   : > { %v875_v27 = vpop.f32.mrb[0].mxu1  ;;  %v903_v20 = vpop.f32.mrb[0].mxu0 }
 0x22e   : > { %v653_v31 = vadd.f32 %v903_v20, %v875_v27  ;;  %v518_v32 = vpop.f32.mrb[1].mxu1  ;;  %v647_v33 = vpop.f32.mrb[1].mxu0 }
 0x22f   : > { %v648_v34 = vadd.f32 %v647_v33, %v518_v32 }
 0x230   : > { %v694_v24 = vadd.f32 %v817_v37, %v653_v31 }
 0x231   : > { %v693_v35 = vadd.f32 %v817_v37, %v648_v34 }
 0x232   : > { %702 = vst.msk [vmem:[%s1398_s8 + $0x8] sm:$0xff] %vm219_vm0, %v694_v24 }
 0x233   : > { %701 = vst.msk [vmem:[%s1398_s8] sm:$0xff] %vm219_vm0, %v693_v35 }
 0x235   : > { %v878_v25 = vpop.f32.mrb[2].mxu1  ;;  %v906_v36 = vpop.f32.mrb[2].mxu0 }
 0x236   : > { %v663_v21 = vadd.f32 %v906_v36, %v878_v25  ;;  %v528_v38 = vpop.f32.mrb[3].mxu1  ;;  %v657_v39 = vpop.f32.mrb[3].mxu0 }
 0x237   : > { %v658_v40 = vadd.f32 %v657_v39, %v528_v38 }
 0x238   : > { %v696_v41 = vadd.f32 %v817_v37, %v663_v21 }
 0x239   : > { %v695_v46 = vadd.f32 %v817_v37, %v658_v40 }
 0x23a   : > { %704 = vst.msk [vmem:[%s1398_s8 + $0x18] sm:$0xff] %vm219_vm0, %v696_v41 }
 0x23b   : > { %703 = vst.msk [vmem:[%s1398_s8 + $0x10] sm:$0xff] %vm219_vm0, %v695_v46 }
 0x23d   : > { %v881_v47 = vpop.f32.mrb[4].mxu1  ;;  %v909_v48 = vpop.f32.mrb[4].mxu0 }
 0x23e   : > { %v673_v49 = vadd.f32 %v909_v48, %v881_v47  ;;  %v538_v50 = vpop.f32.mrb[5].mxu1  ;;  %v667_v29 = vpop.f32.mrb[5].mxu0 }
 0x23f   : > { %v668_v51 = vadd.f32 %v667_v29, %v538_v50 }
 0x240   : > { %v698_v28 = vadd.f32 %v817_v37, %v673_v49 }
 0x241   : > { %v697_v52 = vadd.f32 %v817_v37, %v668_v51 }
 0x242   : > { %706 = vst.msk [vmem:[%s1398_s8 + $0x28] sm:$0xff] %vm219_vm0, %v698_v28 }
 0x243   : > { %705 = vst.msk [vmem:[%s1398_s8 + $0x20] sm:$0xff] %vm219_vm0, %v697_v52 }
 0x245   : > { %v884_v53 = vpop.f32.mrb[6].mxu1  ;;  %v912_v54 = vpop.f32.mrb[6].mxu0 }
 0x246   : > { %v683_v55 = vadd.f32 %v912_v54, %v884_v53  ;;  %v548_v56 = vpop.f32.mrb[7].mxu1  ;;  %v677_v59 = vpop.f32.mrb[7].mxu0 }
 0x247   : > { %v678_v60 = vadd.f32 %v677_v59, %v548_v56 }
 0x248   : > { %v700_v61 = vadd.f32 %v817_v37, %v683_v55 }
 0x249   : > { %v699_v62 = vadd.f32 %v817_v37, %v678_v60 }
 0x24a   : > { %708 = vst.msk [vmem:[%s1398_s8 + $0x38] sm:$0xff] %vm219_vm0, %v700_v61 }
 0x24b   : > { %707 = vst.msk [vmem:[%s1398_s8 + $0x30] sm:$0xff] %vm219_vm0, %v699_v62 }
 0x24c   : > { %1023 = shalt.err (!%p1020_p3)
}
 0x24d   : > { %s1024_s27 = scalar_lea.hbm %s1417_s13, 1024  ;;  %s1028_s30 = scalar_lea.hbm %s1472_s4, 2048 }
 0x24e   : > { %p1025_p4 = scmp.ne.s32.totalorder %s1417_s13, %s1024_s27  ;;  %p1029_p9 = scmp.lt.u32.totalorder %s1417_s13, %s1472_s4 }
 0x24f   : > { %p1030_p10 = scmp.lt.u32.totalorder %s1028_s30, %s1024_s27  ;;  %p1032_p12 = scmp.lt.u32.totalorder %s1024_s27, %s1417_s13 }
 0x250   : > { %p1026_p7 = pnand %p1025_p4, %p1140_p5 }
 0x251   : > { %p1031_p11 = por %p1030_p10, %p1029_p9 }
 0x252   : > { %p1027_p8 = pneg %p1026_p7 }
 0x253   : > { %p1033_p13 = por %p1032_p12, %p1031_p11 }
 0x255   : > { %p1034_p0 = pnand %p1033_p13, %p1027_p8 }
 0x257   : > { %1037 = shalt.err (!%p1034_p0)
}
 0x258   : > { %s1075_s7 = smov 128   ;;  %s1076_s8 = smov 8  }
 0x259   : > { %953 = dma.vmem_to_hbm [thread:$0]  (%p1140_p5), %s1419_s10, 1024, %s1417_s13, %s1427_s19, %s1075_s7, %s1075_s7, %s1076_s8  }
 0x25a PF: > { %p959_p1 = scmp.ge.s32.totalorder %s1072_s18, 2  ;;  %s738_s9 = sand.u32 1, %s1060_s15  }
 0x25b   : > { %s739_s11 = scalar_lea.sflag [#allocation3], %s738_s9 }
 0x25c   : > { %p956_p2 = pnand %p959_p1, %p1144_p6 }
 0x25e   : > { %1055 = dma.done.wait (!%p956_p2), %s739_s11, 1024  }
 0x25f   : > { %1057 = vsyncadd (!%p956_p2), %s739_s11, 4294966272  ;;  %p14_p3 = scmp.ge.s32.totalorder %s1127_s21, 4   ;;  %s1475_s15 = smov %s1064_s16 }
 0x260   : > { %s1476_s16 = smov %s1068_s17  ;;  %s1477_s17 = smov %s1138_s24 }
 0x261   : > { %s1478_s18 = smov %s1127_s21  ;;  %16 = sbr.rel (!%p14_p3) target bundleno = 3 (0x3), region = 72 }
 0x268   :  { %744 = vsyncpa [#allocation3], 1 }
 0x269   :  { %746 = vsyncpa [#allocation3 + $0x1], 1 }

</bundles_post_ra>
